<compile_context>
chip_gen: v5e
topology: v5e:2x2
jax: 0.10.0
libtpu: 0.0.40
codegen_flags: <defaults>
</compile_context>

<pallas_src>
import functools

import jax
import jax.numpy as jnp
import numpy as np
from jax.experimental import pallas as pl
from jax.experimental.pallas import tpu as pltpu

_LEAKY_SLOPE = 0.1  # must stay in (0, 1) for the max(x, slope*x) == LeakyReLU identity


def _skfusion_kernel(x2d_ref, x3d_ref, wa_ref, wmid_ref, wout_ref, out_ref,
                     pooled_acc, wsel, *, n_total, cin2d, cin3d):
    # Grid = (batch, pass, n_tile).
    #   x2d_ref: (1, Cin2d, TN)   x3d_ref: (1, Cin3d, TN)   out_ref: (1, C, TN)
    #   wa_ref:  (C, Cin2d+Cin3d+2) packed [W1 | b1 | W2 | b2]
    #   wmid_ref: (Cmid, C)   wout_ref: (2C, Cmid) rows pre-paired [slot0 ; slot1]
    #   pooled_acc, wsel: (C, 1) VMEM scratch persisting across grid steps.
    p = pl.program_id(1)
    n = pl.program_id(2)

    wa = wa_ref[...]
    W1 = wa[:, :cin2d]
    b1 = wa[:, cin2d:cin2d + 1]
    W2 = wa[:, cin2d + 1:cin2d + 1 + cin3d]
    b2 = wa[:, cin2d + 1 + cin3d:cin2d + 2 + cin3d]

    x2d = x2d_ref[0]                                     # (Cin2d, TN)
    x3d = x3d_ref[0]                                     # (Cin3d, TN)

    # align1 / align2: 1x1 conv == channel matmul (MXU) + bias + LeakyReLU(0.1).
    # max(x, a*x) == LeakyReLU(x) for 0 < a < 1 — one VALU op cheaper than where().
    f2d = jnp.dot(W1, x2d, preferred_element_type=jnp.float32) + b1
    f2d = jnp.maximum(f2d, _LEAKY_SLOPE * f2d)           # (C, TN)
    f3d = jnp.dot(W2, x3d, preferred_element_type=jnp.float32) + b2
    f3d = jnp.maximum(f3d, _LEAKY_SLOPE * f3d)           # (C, TN)

    @pl.when(p == 0)
    def _pool_pass():
        @pl.when(n == 0)
        def _init():
            pooled_acc[...] = jnp.zeros_like(pooled_acc)
        # Two separate lane reductions (XLU slot) instead of reducing (f2d + f3d):
        # saves a (C,TN) VALU add and the extra (C,TN) temporary.
        pooled_acc[...] += (jnp.sum(f2d, axis=1, keepdims=True)
                            + jnp.sum(f3d, axis=1, keepdims=True))

    @pl.when(jnp.logical_and(p == 1, n == 0))
    def _fc_chain_once_per_batch():
        pooled = pooled_acc[...] * (1.0 / n_total)                             # (C, 1)
        mid = jnp.maximum(
            jnp.dot(wmid_ref[...], pooled, preferred_element_type=jnp.float32), 0.0)
        y = jax.nn.sigmoid(
            jnp.dot(wout_ref[...], mid, preferred_element_type=jnp.float32))   # (2C, 1)
        c = pooled.shape[0]
        # 2-way pairwise softmax: softmax([y1, y2])[0] == sigmoid(y1 - y2).
        wsel[...] = jax.nn.sigmoid(y[:c, :] - y[c:, :])

    @pl.when(p == 1)
    def _apply_pass():
        w1 = wsel[...]                                    # (C, 1), broadcast over lanes
        out_ref[0] = (f2d * w1 + f3d * (1.0 - w1)).astype(out_ref.dtype)


def prepare_params(W1, b1, W2, b2, Wmid, Wout):
    """One-time parameter prep (outside the per-forward hot path).

    PyTorch conventions:
      W1 (C, Cin2d): align1 Conv2d 1x1 weight (kernel dims squeezed), b1 (C,)
      W2 (C, Cin3d): align2 Conv2d 1x1 weight, b2 (C,)
      Wmid (Cmid, C): fc_mid Linear weight (bias=False)
      Wout (2C, Cmid): fc_out Linear weight (bias=False)
    """
    C = W1.shape[0]
    # fc_out outputs are consumed as reshape(bs, C, 2): row 2c -> pair slot 0 of channel c,
    # row 2c+1 -> pair slot 1.  Split into two contiguous C-row blocks.
    Wout_r = jnp.concatenate([Wout[0::2, :], Wout[1::2, :]], axis=0)            # (2C, Cmid)
    # Pack the four align params into a single lane-aligned slab: [W1 | b1 | W2 | b2].
    walign = jnp.concatenate(
        [W1, b1.reshape(C, 1), W2, b2.reshape(C, 1)], axis=1).astype(jnp.float32)
    return {"walign": walign,
            "Wmid": Wmid.astype(jnp.float32),
            "Wout": Wout_r.astype(jnp.float32)}


def _pick_n_tile(n):
    """Largest lane-aligned tile (<= 8192; review sweet spot 4-16K) that divides N."""
    if n % 128 == 0:
        for cand in (8192, 4096, 2048, 1024, 512, 256, 128):
            if n % cand == 0:
                return cand
    return n  # fallback: full extent (odd spatial sizes)


def skfusion(x2d, x3d, params, out_dtype=jnp.float32):
    """x2d: (B, Cin2d, H, W), x3d: (B, Cin3d, H, W), NCHW; params from prepare_params.
    Returns (B, C, H, W) matching the PyTorch module (out_dtype=bfloat16 optional)."""
    B, Cin2d, H, W_ = x2d.shape
    Cin3d = x3d.shape[1]
    Cmid, C = params["Wmid"].shape
    N = H * W_
    TN = _pick_n_tile(N)
    NT = N // TN
    out_itemsize = jnp.dtype(out_dtype).itemsize

    # Free reshapes (contiguous), no HBM transpose of the activations.
    x2d_f = x2d.reshape(B, Cin2d, N)
    x3d_f = x3d.reshape(B, Cin3d, N)

    kernel = functools.partial(_skfusion_kernel, n_total=N, cin2d=Cin2d, cin3d=Cin3d)

    # Explicit VMEM budget from actual block sizes (double-buffered ins/outs + f32 temps
    # + params), clamped to <= 48 MiB so it always fits v7x's 64 MiB physical VMEM.
    est = (2 * 4 * TN * (Cin2d + Cin3d)       # x2d + x3d blocks, double buffered
           + 2 * out_itemsize * TN * C        # out block, double buffered
           + 2 * 4 * TN * C                   # f2d / f3d temporaries
           + (1 << 19))                       # params + scratch + slack
    vmem_limit = int(min(max(2 * est, 16 * 2**20), 48 * 2**20))

    cost = pl.CostEstimate(
        flops=int(B * N * (4 * C * (Cin2d + Cin3d) + 10 * C)),
        transcendentals=int(B * 3 * C),
        bytes_accessed=int(B * N * (8 * (Cin2d + Cin3d) + out_itemsize * C)),
    )

    # TODO(synk): if B == 1 on v7x one TensorCore idles; a parallel apply-pass split over
    # N-tiles (separate call) would recover it — not needed for the shapes exercised here.
    out = pl.pallas_call(
        kernel,
        out_shape=jax.ShapeDtypeStruct((B, C, N), out_dtype),
        grid_spec=pltpu.PrefetchScalarGridSpec(
            num_scalar_prefetch=0,
            grid=(B, 2, NT),                  # (batch, pass, n_tile)
            in_specs=[
                pl.BlockSpec((1, Cin2d, TN), lambda b, p, n: (b, 0, n)),
                pl.BlockSpec((1, Cin3d, TN), lambda b, p, n: (b, 0, n)),
                pl.BlockSpec((C, Cin2d + Cin3d + 2), lambda b, p, n: (0, 0)),
                pl.BlockSpec((Cmid, C), lambda b, p, n: (0, 0)),
                pl.BlockSpec((2 * C, Cmid), lambda b, p, n: (0, 0)),
            ],
            # Pass 0 never writes: park its block on tile 0, which pass 1 overwrites
            # before the output block index first changes (so no garbage is copied out).
            out_specs=pl.BlockSpec((1, C, TN), lambda b, p, n: (b, 0, n * p)),
            scratch_shapes=[pltpu.VMEM((C, 1), jnp.float32),    # pooled-sum accumulator
                            pltpu.VMEM((C, 1), jnp.float32)],   # SK weight w1
        ),
        compiler_params=pltpu.CompilerParams(
            dimension_semantics=("parallel", "arbitrary", "arbitrary"),
            vmem_limit_bytes=vmem_limit),
        cost_estimate=cost,
    )(x2d_f, x3d_f, params["walign"], params["Wmid"], params["Wout"])

    return out.reshape(B, C, H, W_)


def skfusion_ref(x2d, x3d, W1, b1, W2, b2, Wmid, Wout):
    """Pure-JAX reference mirroring the PyTorch forward in NCHW with raw PyTorch params."""
    B = x2d.shape[0]
    f2d = jnp.einsum('oc,bchw->bohw', W1, x2d) + b1[None, :, None, None]
    f2d = jnp.where(f2d > 0, f2d, 0.1 * f2d)
    f3d = jnp.einsum('oc,bchw->bohw', W2, x3d) + b2[None, :, None, None]
    f3d = jnp.where(f3d > 0, f3d, 0.1 * f3d)
    pooled = jnp.mean(f2d + f3d, axis=(2, 3))                 # (B, C)
    mid = jnp.maximum(pooled @ Wmid.T, 0.0)                   # (B, Cmid)
    y = jax.nn.sigmoid(mid @ Wout.T).reshape(B, -1, 2)        # (B, C, 2)
    w = jax.nn.softmax(y, axis=-1)
    w1 = w[..., 0][:, :, None, None]
    w2 = w[..., 1][:, :, None, None]
    return f2d * w1 + f3d * w2


if __name__ == "__main__":
    # Module config: in_channels_2d=4, in_channels_3d=6, out_channels=32,
    # feat_format='nchw', norm=None, reduction=1.
    C = 32
    Cmid = C  # reduction = 1

    key = jax.random.PRNGKey(0)
    k = jax.random.split(key, 8)

    # Parameters in PyTorch conventions.
    W1 = jax.random.normal(k[2], (C, 4), jnp.float32) * 0.2
    b1 = jax.random.normal(k[3], (C,), jnp.float32) * 0.1
    W2 = jax.random.normal(k[4], (C, 6), jnp.float32) * 0.2
    b2 = jax.random.normal(k[5], (C,), jnp.float32) * 0.1
    Wmid = jax.random.normal(k[6], (Cmid, C), jnp.float32) * 0.2
    Wout = jax.random.normal(k[7], (2 * C, Cmid), jnp.float32) * 0.2

    # One-time parameter prep (hoisted out of the hot path).
    params = prepare_params(W1, b1, W2, b2, Wmid, Wout)
    params = jax.tree_util.tree_map(jax.block_until_ready, params)

    # Case 1: small NCHW inputs (B=2, 16x16) — single N tile, both passes exercised.
    x2d = jax.random.normal(k[0], (2, 4, 16, 16), jnp.float32)
    x3d = jax.random.normal(k[1], (2, 6, 16, 16), jnp.float32)
    out = jax.block_until_ready(skfusion(x2d, x3d, params))
    ref = skfusion_ref(x2d, x3d, W1, b1, W2, b2, Wmid, Wout)
    np.testing.assert_allclose(np.asarray(out), np.asarray(ref), rtol=2e-5, atol=2e-5)

    # Case 2: exercises the multi-tile two-pass path (N=1280 -> TN=256, 5 tiles) and B=1.
    x2d_b = jax.random.normal(jax.random.PRNGKey(1), (1, 4, 32, 40), jnp.float32)
    x3d_b = jax.random.normal(jax.random.PRNGKey(2), (1, 6, 32, 40), jnp.float32)
    out_b = jax.block_until_ready(skfusion(x2d_b, x3d_b, params))
    ref_b = skfusion_ref(x2d_b, x3d_b, W1, b1, W2, b2, Wmid, Wout)
    np.testing.assert_allclose(np.asarray(out_b), np.asarray(ref_b), rtol=2e-5, atol=2e-5)

    # Case 3: optional bf16 output (in-kernel math stays f32; halves HBM write traffic).
    out_bf16 = jax.block_until_ready(skfusion(x2d, x3d, params, out_dtype=jnp.bfloat16))
    np.testing.assert_allclose(np.asarray(out_bf16, dtype=np.float32), np.asarray(ref),
                               rtol=5e-2, atol=5e-2)

    print("KERNEL_OK")
</pallas_src>

<mosaic_0001>
module attributes {stable_mosaic.version = 11 : i64} {
  func.func @_skfusion_kernel(%arg0: i32, %arg1: i32, %arg2: i32, %arg3: memref<1x4x256xf32, #tpu.memory_space<vmem>>, %arg4: memref<1x6x256xf32, #tpu.memory_space<vmem>>, %arg5: memref<32x12xf32, #tpu.memory_space<vmem>>, %arg6: memref<32x32xf32, #tpu.memory_space<vmem>>, %arg7: memref<64x32xf32, #tpu.memory_space<vmem>>, %arg8: memref<1x32x256xf32, #tpu.memory_space<vmem>>, %arg9: memref<32x1xf32, #tpu.memory_space<vmem>>, %arg10: memref<32x1xf32, #tpu.memory_space<vmem>>) attributes {dimension_semantics = [#tpu.dimension_semantics<parallel>, #tpu.dimension_semantics<arbitrary>, #tpu.dimension_semantics<arbitrary>], iteration_bounds = array<i64: 2, 2, 1>, scalar_prefetch = 0 : i64, scratch_operands = 2 : i64, tpu.core_type = #tpu.core_type<tc>, window_params = [{transform_indices = @transform_0, window_bounds = array<i64: 1, 4, 256>}, {transform_indices = @transform_1, window_bounds = array<i64: 1, 6, 256>}, {pipeline_mode = #tpu.pipeline_mode<synchronous>, transform_indices = @transform_2, window_bounds = array<i64: 32, 12>}, {pipeline_mode = #tpu.pipeline_mode<synchronous>, transform_indices = @transform_3, window_bounds = array<i64: 32, 32>}, {pipeline_mode = #tpu.pipeline_mode<synchronous>, transform_indices = @transform_4, window_bounds = array<i64: 64, 32>}, {transform_indices = @transform_5, window_bounds = array<i64: 1, 32, 256>}]} {
    %c0 = arith.constant 0 : index
    %c0_0 = arith.constant 0 : index
    %0 = vector.load %arg5[%c0, %c0_0] : memref<32x12xf32, #tpu.memory_space<vmem>>, vector<32x12xf32>
    %1 = vector.extract_strided_slice %0 {offsets = [0, 0], sizes = [32, 4], strides = [1, 1]} : vector<32x12xf32> to vector<32x4xf32>
    %2 = vector.extract_strided_slice %0 {offsets = [0, 4], sizes = [32, 1], strides = [1, 1]} : vector<32x12xf32> to vector<32x1xf32>
    %3 = vector.extract_strided_slice %0 {offsets = [0, 5], sizes = [32, 6], strides = [1, 1]} : vector<32x12xf32> to vector<32x6xf32>
    %4 = vector.extract_strided_slice %0 {offsets = [0, 11], sizes = [32, 1], strides = [1, 1]} : vector<32x12xf32> to vector<32x1xf32>
    %c0_1 = arith.constant 0 : index
    %c0_2 = arith.constant 0 : index
    %c0_3 = arith.constant 0 : index
    %5 = vector.load %arg3[%c0_1, %c0_2, %c0_3] : memref<1x4x256xf32, #tpu.memory_space<vmem>>, vector<1x4x256xf32>
    %6 = vector.shape_cast %5 : vector<1x4x256xf32> to vector<4x256xf32>
    %c0_4 = arith.constant 0 : index
    %c0_5 = arith.constant 0 : index
    %c0_6 = arith.constant 0 : index
    %7 = vector.load %arg4[%c0_4, %c0_5, %c0_6] : memref<1x6x256xf32, #tpu.memory_space<vmem>>, vector<1x6x256xf32>
    %8 = vector.shape_cast %7 : vector<1x6x256xf32> to vector<6x256xf32>
    %cst = arith.constant dense<0.000000e+00> : vector<32x256xf32>
    %9 = tpu.matmul %1, %6, %cst {dimension_numbers = #tpu.dot_dimension_numbers<[1], [0], [0], [1], [0, 0, 1, 1], [], []>} : vector<32x4xf32>, vector<4x256xf32>, vector<32x256xf32> -> vector<32x256xf32>
    %10 = vector.broadcast %2 : vector<32x1xf32> to vector<32x256xf32>
    %11 = arith.addf %9, %10 : vector<32x256xf32>
    %cst_7 = arith.constant 1.000000e-01 : f32
    %12 = vector.broadcast %cst_7 : f32 to vector<32x256xf32>
    %13 = arith.mulf %12, %11 : vector<32x256xf32>
    %14 = arith.maximumf %11, %13 : vector<32x256xf32>
    %cst_8 = arith.constant dense<0.000000e+00> : vector<32x256xf32>
    %15 = tpu.matmul %3, %8, %cst_8 {dimension_numbers = #tpu.dot_dimension_numbers<[1], [0], [0], [1], [0, 0, 1, 1], [], []>} : vector<32x6xf32>, vector<6x256xf32>, vector<32x256xf32> -> vector<32x256xf32>
    %16 = vector.broadcast %4 : vector<32x1xf32> to vector<32x256xf32>
    %17 = arith.addf %15, %16 : vector<32x256xf32>
    %cst_9 = arith.constant 1.000000e-01 : f32
    %18 = vector.broadcast %cst_9 : f32 to vector<32x256xf32>
    %19 = arith.mulf %18, %17 : vector<32x256xf32>
    %20 = arith.maximumf %17, %19 : vector<32x256xf32>
    %c0_i32 = arith.constant 0 : i32
    %21 = arith.cmpi eq, %arg1, %c0_i32 : i32
    %22 = arith.extui %21 : i1 to i32
    %c0_i32_10 = arith.constant 0 : i32
    %23 = arith.cmpi ne, %22, %c0_i32_10 : i32
    scf.if %23 {
      %c0_i32_15 = arith.constant 0 : i32
      %32 = arith.cmpi eq, %arg2, %c0_i32_15 : i32
      %33 = arith.extui %32 : i1 to i32
      %c0_i32_16 = arith.constant 0 : i32
      %34 = arith.cmpi ne, %33, %c0_i32_16 : i32
      scf.if %34 {
        %cst_23 = arith.constant 0.000000e+00 : f32
        %43 = vector.broadcast %cst_23 : f32 to vector<32x1xf32>
        %c0_24 = arith.constant 0 : index
        %c0_25 = arith.constant 0 : index
        %44 = vector.load %arg9[%c0_24, %c0_25] : memref<32x1xf32, #tpu.memory_space<vmem>>, vector<32x1xf32>
        tpu.vector_store %arg9[%c0_24, %c0_25], %43 {strides = array<i32>} : memref<32x1xf32, #tpu.memory_space<vmem>>, vector<32x1xf32>,
      } else {
      }
      %c0_17 = arith.constant 0 : index
      %c0_18 = arith.constant 0 : index
      %35 = vector.load %arg9[%c0_17, %c0_18] : memref<32x1xf32, #tpu.memory_space<vmem>>, vector<32x1xf32>
      %cst_19 = arith.constant dense<0.000000e+00> : vector<32xf32>
      %36 = vector.multi_reduction <add>, %14, %cst_19 [1] : vector<32x256xf32> to vector<32xf32>
      %37 = vector.shape_cast %36 : vector<32xf32> to vector<32x1xf32>
      %cst_20 = arith.constant dense<0.000000e+00> : vector<32xf32>
      %38 = vector.multi_reduction <add>, %20, %cst_20 [1] : vector<32x256xf32> to vector<32xf32>
      %39 = vector.shape_cast %38 : vector<32xf32> to vector<32x1xf32>
      %40 = arith.addf %37, %39 : vector<32x1xf32>
      %41 = arith.addf %35, %40 : vector<32x1xf32>
      %c0_21 = arith.constant 0 : index
      %c0_22 = arith.constant 0 : index
      %42 = vector.load %arg9[%c0_21, %c0_22] : memref<32x1xf32, #tpu.memory_space<vmem>>, vector<32x1xf32>
      tpu.vector_store %arg9[%c0_21, %c0_22], %41 {strides = array<i32>} : memref<32x1xf32, #tpu.memory_space<vmem>>, vector<32x1xf32>,
    } else {
    }
    %c1_i32 = arith.constant 1 : i32
    %24 = arith.cmpi eq, %arg1, %c1_i32 : i32
    %c0_i32_11 = arith.constant 0 : i32
    %25 = arith.cmpi eq, %arg2, %c0_i32_11 : i32
    %26 = arith.andi %24, %25 : i1
    %27 = arith.extui %26 : i1 to i32
    %c0_i32_12 = arith.constant 0 : i32
    %28 = arith.cmpi ne, %27, %c0_i32_12 : i32
    scf.if %28 {
      %c0_15 = arith.constant 0 : index
      %c0_16 = arith.constant 0 : index
      %32 = vector.load %arg9[%c0_15, %c0_16] : memref<32x1xf32, #tpu.memory_space<vmem>>, vector<32x1xf32>
      %cst_17 = arith.constant 3.906250e-03 : f32
      %33 = vector.broadcast %cst_17 : f32 to vector<32x1xf32>
      %34 = arith.mulf %32, %33 : vector<32x1xf32>
      %c0_18 = arith.constant 0 : index
      %c0_19 = arith.constant 0 : index
      %35 = vector.load %arg6[%c0_18, %c0_19] : memref<32x32xf32, #tpu.memory_space<vmem>>, vector<32x32xf32>
      %cst_20 = arith.constant dense<0.000000e+00> : vector<32x1xf32>
      %36 = tpu.matmul %35, %34, %cst_20 {dimension_numbers = #tpu.dot_dimension_numbers<[1], [0], [0], [1], [0, 0, 1, 1], [], []>} : vector<32x32xf32>, vector<32x1xf32>, vector<32x1xf32> -> vector<32x1xf32>
      %cst_21 = arith.constant 0.000000e+00 : f32
      %37 = vector.broadcast %cst_21 : f32 to vector<32x1xf32>
      %38 = arith.maximumf %36, %37 : vector<32x1xf32>
      %c0_22 = arith.constant 0 : index
      %c0_23 = arith.constant 0 : index
      %39 = vector.load %arg7[%c0_22, %c0_23] : memref<64x32xf32, #tpu.memory_space<vmem>>, vector<64x32xf32>
      %cst_24 = arith.constant dense<0.000000e+00> : vector<64x1xf32>
      %40 = tpu.matmul %39, %38, %cst_24 {dimension_numbers = #tpu.dot_dimension_numbers<[1], [0], [0], [1], [0, 0, 1, 1], [], []>} : vector<64x32xf32>, vector<32x1xf32>, vector<64x1xf32> -> vector<64x1xf32>
      %41 = arith.negf %40 : vector<64x1xf32>
      %42 = math.exp %41 : vector<64x1xf32>
      %cst_25 = arith.constant 1.000000e+00 : f32
      %43 = vector.broadcast %cst_25 : f32 to vector<64x1xf32>
      %44 = arith.addf %43, %42 : vector<64x1xf32>
      %45 = arith.divf %43, %44 : vector<64x1xf32>
      %46 = vector.extract_strided_slice %45 {offsets = [0, 0], sizes = [32, 1], strides = [1, 1]} : vector<64x1xf32> to vector<32x1xf32>
      %47 = vector.extract_strided_slice %45 {offsets = [32, 0], sizes = [32, 1], strides = [1, 1]} : vector<64x1xf32> to vector<32x1xf32>
      %48 = arith.subf %46, %47 : vector<32x1xf32>
      %49 = arith.negf %48 : vector<32x1xf32>
      %50 = math.exp %49 : vector<32x1xf32>
      %cst_26 = arith.constant 1.000000e+00 : f32
      %51 = vector.broadcast %cst_26 : f32 to vector<32x1xf32>
      %52 = arith.addf %51, %50 : vector<32x1xf32>
      %53 = arith.divf %51, %52 : vector<32x1xf32>
      %c0_27 = arith.constant 0 : index
      %c0_28 = arith.constant 0 : index
      %54 = vector.load %arg10[%c0_27, %c0_28] : memref<32x1xf32, #tpu.memory_space<vmem>>, vector<32x1xf32>
      tpu.vector_store %arg10[%c0_27, %c0_28], %53 {strides = array<i32>} : memref<32x1xf32, #tpu.memory_space<vmem>>, vector<32x1xf32>,
    } else {
    }
    %c1_i32_13 = arith.constant 1 : i32
    %29 = arith.cmpi eq, %arg1, %c1_i32_13 : i32
    %30 = arith.extui %29 : i1 to i32
    %c0_i32_14 = arith.constant 0 : i32
    %31 = arith.cmpi ne, %30, %c0_i32_14 : i32
    scf.if %31 {
      %c0_15 = arith.constant 0 : index
      %c0_16 = arith.constant 0 : index
      %32 = vector.load %arg10[%c0_15, %c0_16] : memref<32x1xf32, #tpu.memory_space<vmem>>, vector<32x1xf32>
      %33 = vector.broadcast %32 : vector<32x1xf32> to vector<32x256xf32>
      %34 = arith.mulf %14, %33 : vector<32x256xf32>
      %cst_17 = arith.constant 1.000000e+00 : f32
      %35 = vector.broadcast %cst_17 : f32 to vector<32x1xf32>
      %36 = arith.subf %35, %32 : vector<32x1xf32>
      %37 = vector.broadcast %36 : vector<32x1xf32> to vector<32x256xf32>
      %38 = arith.mulf %20, %37 : vector<32x256xf32>
      %39 = arith.addf %34, %38 : vector<32x256xf32>
      %c0_18 = arith.constant 0 : index
      %c0_19 = arith.constant 0 : index
      %c0_20 = arith.constant 0 : index
      %40 = vector.load %arg8[%c0_18, %c0_19, %c0_20] : memref<1x32x256xf32, #tpu.memory_space<vmem>>, vector<1x32x256xf32>
      %41 = vector.shape_cast %40 : vector<1x32x256xf32> to vector<32x256xf32>
      %42 = vector.shape_cast %39 : vector<32x256xf32> to vector<1x32x256xf32>
      tpu.vector_store %arg8[%c0_18, %c0_19, %c0_20], %42 {strides = array<i32>} : memref<1x32x256xf32, #tpu.memory_space<vmem>>, vector<1x32x256xf32>,
    } else {
    }
    return
  }
  func.func @transform_0(%arg0: i32, %arg1: i32, %arg2: i32) -> (i32, i32, i32) {
    %c0_i32 = arith.constant 0 : i32
    %c0_i32_0 = arith.constant 0 : i32
    return %arg0, %c0_i32, %arg2 : i32, i32, i32
  }
  func.func @transform_1(%arg0: i32, %arg1: i32, %arg2: i32) -> (i32, i32, i32) {
    %c0_i32 = arith.constant 0 : i32
    %c0_i32_0 = arith.constant 0 : i32
    return %arg0, %c0_i32, %arg2 : i32, i32, i32
  }
  func.func @transform_2(%arg0: i32, %arg1: i32, %arg2: i32) -> (i32, i32) {
    %c0_i32 = arith.constant 0 : i32
    %c0_i32_0 = arith.constant 0 : i32
    %c0_i32_1 = arith.constant 0 : i32
    return %c0_i32, %c0_i32_0 : i32, i32
  }
  func.func @transform_3(%arg0: i32, %arg1: i32, %arg2: i32) -> (i32, i32) {
    %c0_i32 = arith.constant 0 : i32
    %c0_i32_0 = arith.constant 0 : i32
    %c0_i32_1 = arith.constant 0 : i32
    return %c0_i32, %c0_i32_0 : i32, i32
  }
  func.func @transform_4(%arg0: i32, %arg1: i32, %arg2: i32) -> (i32, i32) {
    %c0_i32 = arith.constant 0 : i32
    %c0_i32_0 = arith.constant 0 : i32
    %c0_i32_1 = arith.constant 0 : i32
    return %c0_i32, %c0_i32_0 : i32, i32
  }
  func.func @transform_5(%arg0: i32, %arg1: i32, %arg2: i32) -> (i32, i32, i32) {
    %0 = arith.muli %arg2, %arg1 : i32
    %c0_i32 = arith.constant 0 : i32
    %c0_i32_0 = arith.constant 0 : i32
    return %arg0, %c0_i32, %0 : i32, i32, i32
  }
}

</mosaic_0001>

<bundles_post_ra>
// kernel: tpu_custom_call.1
= control target key start
LH: loop header
LB: loop body
LE: loop exit
PB: predicated region body
PF: predicated region fallthrough
CT: control target
= control target key end

     0   :  { %s1933_s0 = inlined_call_operand.vmem [shape: f32[2,4,256], index: 0, kind: input, shape index: {}]   ;;  %s1934_s1 = inlined_call_operand.vmem [shape: f32[2,6,256], index: 1, kind: input, shape index: {}]   ;;  %s1935_s2 = inlined_call_operand.vmem [shape: f32[32,12], index: 2, kind: input, shape index: {}]   ;;  %s1936_s3 = inlined_call_operand.vmem [shape: f32[32,32], index: 3, kind: input, shape index: {}]   ;;  %s1937_s4 = inlined_call_operand.vmem [shape: f32[64,32], index: 4, kind: input, shape index: {}]   ;;  %s1938_s5 = inlined_call_operand.hbm [shape: f32[2,32,256], index: 5, kind: output, shape index: {}]  }
   0x1   :  { %1939 = sst [smem:[#allocation7_spill]] %s1933_s0 }
   0x2   :  { %10 = vsyncpa [#allocation5], 0 }
   0x3   :  { %12 = vsyncpa [#allocation5 + $0x1], 0  ;;  %s1512_s18 = smov 0   ;;  %s1514_s19 = smov 0  }
   0x4   :  { %s1516_s20 = smov 0   ;;  %s1518_s21 = smov 0  }
   0x5   :  { %s1520_s22 = smov 0   ;;  %s1522_s23 = smov 0  }
   0x6   :  { %s1524_s24 = smov 0   ;;  %s1526_s25 = smov 0  }
   0x7 LB: > { %s1166_s26 = sadd.s32 4294967295, %s1473_s25   ;;  %s1167_s27 = sadd.s32 4294967294, %s1473_s25   ;;  %s1473_s25 = sphi %s1526_s25, %s18_s25   ;;  %s1469_s24 = sphi %s1524_s24, %s1965_s24   ;;  %s1465_s23 = sphi %s1522_s23, %s1964_s23   ;;  %s1461_s22 = sphi %s1520_s22, %s1963_s22   ;;  %s1457_s21 = sphi %s1518_s21, %s1962_s21   ;;  %s1453_s20 = sphi %s1516_s20, %s1961_s20   ;;  %s1449_s19 = sphi %s1514_s19, %s1960_s19   ;;  %s1445_s18 = sphi %s1512_s18, %s1959_s18  }
   0x8   : > { %s33_s28 = sadd.s32 1, %s1465_s23  ;;  %s37_s29 = sadd.s32 1, %s1469_s24 }
   0x9   : > { %p35_p0 = scmp.ge.s32.totalorder %s33_s28, 2  ;;  %p177_p1 = scmp.ne.s32.totalorder %s1453_s20, %s1449_s19 }
   0xa   : > { %p178_p2 = scmp.eq.s32.totalorder %s1166_s26, 3  ;;  %p183_p4 = scmp.ne.s32.totalorder %s1449_s19, %s1445_s18 }
   0xb   : > { %s1967_s28 = smov (%p35_p0, %s33_s28), 0  ;;  %s1969_s29 = smov (!%p35_p0, %s37_s29), %s1469_s24 }
   0xc   : > { %p1561_p3 = por %p178_p2, %p177_p1  ;;  %p39_p5 = scmp.ge.s32.totalorder %s1969_s29, 2 }
   0xd   : > { %p184_p6 = scmp.eq.s32.totalorder %s1167_s27, 3  ;;  %p1170_p7 = scmp.ge.s32.totalorder %s1473_s25, 1 }
   0xe   : > { %p237_p8 = scmp.lt.s32.totalorder %s1473_s25, 5  ;;  %s1971_s29 = smov (%p39_p5, %s1969_s29), 0 }
   0xf   : > { %p1571_p9 = por %p184_p6, %p183_p4  ;;  %s162_s7 = ssub.s32 %s1469_s24, %s1971_s29 }
  0x10   : > { %p238_p10 = pnand %p1170_p7, %p237_p8  ;;  %s167_s8 = sadd.s32 1, %s1453_s20 }
  0x11   : > { %p165_p11 = scmp.eq.s32.totalorder %s162_s7, 0  ;;  %s275_s14 = sand.u32 (!%p238_p10), 1, %s1449_s19  }
  0x12   : > { %241 = sbr.rel (%p238_p10) target bundleno = 979 (0x3d3), region = 40  ;;  %s1475_s15 = smov (!%p238_p10), 123  }
  0x13   : > { %s1579_s9 = scalar_select %p165_p11, %s1453_s20, %s167_s8  }
  0x14   : > { %s1590_s16 = sshll.u32 (!%p238_p10), %s275_s14, 6  ;;  %p279_p12 = scmp.lt.s32.totalorder (!%p238_p10), %s1461_s22, 1 }
  0x15   : > { %s1942_s0 = sld [smem:[#allocation7_spill]] (!%p238_p10)  ;;  %p1196_p13 = scmp.ne.s32.totalorder (!%p238_p10), %s1457_s21, 0 }
  0x17   : > { %v300_v0 = vld [vmem:[%s1935_s2] sm:$0xff]  ;;  %v302_v1 = vld [vmem:[%s1935_s2 + $0x10] sm:$0xff]  ;;  %s280_s17 = scalar_select %p279_p12, %s1461_s22, 1  ;;  %v301_v2 = vld [vmem:[%s1935_s2 + $0x8] sm:$0xff]  ;;  %vm340_vm0 = vcmask 1043456   ;;  %vm331_vm1 = vcmask 31744  }
  0x18   : > { %435 = vrot.lane.b32.xlu0 %v300_v0, %s1475_s15  ;;  %439 = vrot.lane.b32.xlu1 %v302_v1, %s1475_s15  ;;  %v303_v3 = vld [vmem:[%s1935_s2 + $0x18] sm:$0xff]  ;;  %vm452_vm2 = vcmask 1045504   ;;  %v1476_v9 = vmov 4   ;;  %v1477_v10 = vmov 11   ;;  %vm443_vm3 = vcmask 48128  }
  0x19   : > { %s1228_s26 = sshll.u32 %s280_s17, 3  ;;  %s1229_s27 = sshll.u32 %s280_s17, 4  ;;  %1324 = vset.pattern.permute.xlu1 %v1476_v9  ;;  %1322 = vset.pattern.permute.xlu2 %v1476_v9 }
  0x1a   : > { %s296_s8 = scalar_lea.vmem %s1934_s1, %s1229_s27  ;;  %309 = vperm.xlu2 %1322, %v300_v0   ;;  %1323 = vset.pattern.permute.xlu0 %v1476_v9 }
  0x1b   : > { %s286_s13 = scalar_lea.vmem %s1942_s0, %s1228_s26  ;;  %v305_v7 = vld [vmem:[%s296_s8] sm:$0x3f]  ;;  %v306_v8 = vld [vmem:[%s296_s8 + $0x8] sm:$0x3f] }
  0x1c   : > { %v304_v4 = vld [vmem:[%s286_s13] sm:$0xff]  ;;  %1186 = vmatpush.msk.msra.mxu2 %vm452_vm2, %v305_v7  ;;  %1191 = vmatpush.msk.msra.mxu3 %vm452_vm2, %v306_v8 }
  0x1d   : > { %328 = vst [vmem:[#allocation1] ss:$2 sm:$0xff] %v304_v4 }
  0x20   : > { %437 = vrot.lane.b32.xlu0 %v301_v2, %s1475_s15  ;;  %441 = vrot.lane.b32.xlu1 %v303_v3, %s1475_s15  ;;  %s1639_s15 = scalar_lea.vmem [#allocation4], %s1590_s16 }
  0x22   : > { %314 = vperm.xlu2 %1322, %v301_v2  }
  0x24   : > { %v329_v5 = vld.sshfl [vmem:[#allocation1] sm:$0xff pattern:$0x75316420]  ;;  %v330_v6 = vld.sshfl [vmem:[#allocation1 + $0x8] sm:$0xff pattern:$0x75316420] }
  0x25   : > { %1176 = vmatpush.msk.msra.mxu0 %vm340_vm0, %v329_v5  ;;  %1181 = vmatpush.msk.msra.mxu1 %vm340_vm0, %v330_v6 }
  0x26   : > { %1177 = vmatmul.msk.f32.vlgmr.msra.gmra.mxu0 %vm331_vm1, %v300_v0  ;;  %1182 = vmatmul.msk.f32.vlgmr.msra.gmra.mxu1 %vm331_vm1, %v300_v0 }
  0x28   : > { %324 = vperm.xlu1 %1324, %v303_v3   ;;  %319 = vperm.xlu0 %1323, %v302_v1  }
  0x2a   : > { %1325 = vset.pattern.permute.xlu2 %v1477_v10 }
  0x2b   : > { %420 = vperm.xlu2 %1325, %v300_v0  }
  0x2e   : > { %1178 = vmatmul.msk.f32.gmra.mxu0 %vm331_vm1, %v301_v2  ;;  %1183 = vmatmul.msk.f32.gmra.mxu1 %vm331_vm1, %v301_v2 }
  0x30   : > { %1326 = vset.pattern.permute.xlu1 %v1477_v10  ;;  %1327 = vset.pattern.permute.xlu0 %v1477_v10 }
  0x31   : > { %424 = vperm.xlu1 %1326, %v301_v2   ;;  %432 = vperm.xlu0 %1327, %v303_v3  }
  0x33   : > { %428 = vperm.xlu2 %1325, %v302_v1  }
  0x36   : > { %1179 = vmatmul.msk.f32.gmra.mxu0 %vm331_vm1, %v302_v1  ;;  %1184 = vmatmul.msk.f32.gmra.mxu1 %vm331_vm1, %v302_v1 }
  0x3e   : > { %1180 = vmatmul.msk.f32.gmra.mxu0 %vm331_vm1, %v303_v3  ;;  %1185 = vmatmul.msk.f32.gmra.mxu1 %vm331_vm1, %v303_v3 }
  0x74   : > { %v310_v17 = vpop.permute.xlu2 %309 }
  0x7c   : > { %v315_v26 = vpop.permute.xlu2 %314 }
  0x85   : > { %v421_v51 = vpop.permute.xlu2 %420 }
  0x8a   : > { %v436_v11 = vpop.permute.xlu0 %435  ;;  %v440_v13 = vpop.permute.xlu1 %439 }
  0x8b   : > { %1187 = vmatmul.msk.f32.vlgmr.msra.gmra.mxu2 %vm443_vm3, %v436_v11  ;;  %1192 = vmatmul.msk.f32.vlgmr.msra.gmra.mxu3 %vm443_vm3, %v436_v11 }
  0x8d   : > { %v429_v5 = vpop.permute.xlu2 %428 }
  0x92   : > { %v438_v12 = vpop.permute.xlu0 %437  ;;  %v442_v14 = vpop.permute.xlu1 %441 }
  0x93   : > { %1188 = vmatmul.msk.f32.gmra.mxu2 %vm443_vm3, %v438_v12  ;;  %1193 = vmatmul.msk.f32.gmra.mxu3 %vm443_vm3, %v438_v12 }
  0x9a   : > { %v325_v35 = vpop.permute.xlu1 %324  ;;  %v320_v36 = vpop.permute.xlu0 %319 }
  0x9b   : > { %1189 = vmatmul.msk.f32.gmra.mxu2 %vm443_vm3, %v440_v13  ;;  %1194 = vmatmul.msk.f32.gmra.mxu3 %vm443_vm3, %v440_v13 }
  0xa3   : > { %1190 = vmatmul.msk.f32.gmra.mxu2 %vm443_vm3, %v442_v14  ;;  %1195 = vmatmul.msk.f32.gmra.mxu3 %vm443_vm3, %v442_v14  ;;  %v362_v15 = vpop.f32.mrf.mxu0  ;;  %v391_v16 = vpop.f32.mrf.mxu1 }
  0xa4   : > { %v363_v18 = vadd.f32 %v362_v15, %v310_v17  ;;  %v392_v19 = vadd.f32 %v391_v16, %v310_v17  ;;  %v425_v60 = vpop.permute.xlu1 %424  ;;  %v433_v14 = vpop.permute.xlu0 %432 }
  0xa6   : > { %v403_v20 = vmul.f32 0.1, %v363_v18  ;;  %v404_v21 = vmul.f32 0.1, %v392_v19 }
  0xa8   : > { %v1606_v22 = vmax.f32 %v363_v18, %v403_v20  ;;  %v1608_v23 = vmax.f32 %v392_v19, %v404_v21 }
  0xab   : > { %v365_v24 = vpop.f32.mrf.mxu0  ;;  %v394_v25 = vpop.f32.mrf.mxu1 }
  0xac   : > { %v366_v27 = vadd.f32 %v365_v24, %v315_v26  ;;  %v395_v28 = vadd.f32 %v394_v25, %v315_v26 }
  0xae   : > { %v405_v29 = vmul.f32 0.1, %v366_v27  ;;  %v406_v30 = vmul.f32 0.1, %v395_v28 }
  0xb0   : > { %v1610_v31 = vmax.f32 %v366_v27, %v405_v29  ;;  %v1612_v32 = vmax.f32 %v395_v28, %v406_v30 }
  0xb3   : > { %v368_v33 = vpop.f32.mrf.mxu0  ;;  %v397_v34 = vpop.f32.mrf.mxu1 }
  0xb4   : > { %v369_v38 = vadd.f32 %v368_v33, %v320_v36  ;;  %v398_v39 = vadd.f32 %v397_v34, %v320_v36 }
  0xb6   : > { %v407_v43 = vmul.f32 0.1, %v369_v38  ;;  %v408_v44 = vmul.f32 0.1, %v398_v39 }
  0xb8   : > { %v1614_v47 = vmax.f32 %v369_v38, %v407_v43  ;;  %v1616_v48 = vmax.f32 %v398_v39, %v408_v44 }
  0xbb   : > { %v371_v37 = vpop.f32.mrf.mxu0  ;;  %v400_v41 = vpop.f32.mrf.mxu1 }
  0xbc   : > { %v372_v40 = vadd.f32 %v371_v37, %v325_v35  ;;  %v401_v42 = vadd.f32 %v400_v41, %v325_v35 }
  0xbe   : > { %v409_v45 = vmul.f32 0.1, %v372_v40  ;;  %v410_v46 = vmul.f32 0.1, %v401_v42 }
  0xc0   : > { %v1618_v49 = vmax.f32 %v372_v40, %v409_v45  ;;  %v1620_v50 = vmax.f32 %v401_v42, %v410_v46 }
 0x10e   : > { %v476_v52 = vpop.f32.mrf.mxu2  ;;  %v505_v53 = vpop.f32.mrf.mxu3 }
 0x10f   : > { %v477_v54 = vadd.f32 %v476_v52, %v421_v51  ;;  %v506_v55 = vadd.f32 %v505_v53, %v421_v51 }
 0x111   : > { %v517_v56 = vmul.f32 0.1, %v477_v54  ;;  %v518_v57 = vmul.f32 0.1, %v506_v55 }
 0x113   : > { %v1622_v58 = vmax.f32 %v477_v54, %v517_v56  ;;  %v1624_v59 = vmax.f32 %v506_v55, %v518_v57 }
 0x116   : > { %v479_v61 = vpop.f32.mrf.mxu2  ;;  %v508_v62 = vpop.f32.mrf.mxu3 }
 0x117   : > { %v480_v63 = vadd.f32 %v479_v61, %v425_v60  ;;  %v509_v0 = vadd.f32 %v508_v62, %v425_v60 }
 0x119   : > { %v519_v1 = vmul.f32 0.1, %v480_v63  ;;  %v520_v2 = vmul.f32 0.1, %v509_v0 }
 0x11b   : > { %v1626_v3 = vmax.f32 %v480_v63, %v519_v1  ;;  %v1628_v4 = vmax.f32 %v509_v0, %v520_v2 }
 0x11e   : > { %v482_v6 = vpop.f32.mrf.mxu2  ;;  %v511_v7 = vpop.f32.mrf.mxu3 }
 0x11f   : > { %v483_v8 = vadd.f32 %v482_v6, %v429_v5  ;;  %v512_v9 = vadd.f32 %v511_v7, %v429_v5 }
 0x121   : > { %v521_v10 = vmul.f32 0.1, %v483_v8  ;;  %v522_v11 = vmul.f32 0.1, %v512_v9 }
 0x123   : > { %v1630_v12 = vmax.f32 %v483_v8, %v521_v10  ;;  %v1632_v13 = vmax.f32 %v512_v9, %v522_v11 }
 0x126   : > { %v485_v15 = vpop.f32.mrf.mxu2  ;;  %v514_v16 = vpop.f32.mrf.mxu3 }
 0x127   : > { %v486_v17 = vadd.f32 %v485_v15, %v433_v14  ;;  %v515_v18 = vadd.f32 %v514_v16, %v433_v14  ;;  %536 = sbr.rel (%p1196_p13) target bundleno = 440 (0x1b8), region = 44 }
 0x129   : > { %v523_v19 = vmul.f32 0.1, %v486_v17  ;;  %v524_v20 = vmul.f32 0.1, %v515_v18 }
 0x12b   : > { %v1634_v21 = vmax.f32 %v486_v17, %v523_v19  ;;  %v1636_v24 = vmax.f32 %v515_v18, %v524_v20 }
 0x12c   : > { %v562_v25 = vadd.f32 %v1624_v59, %v1622_v58  ;;  %v556_v26 = vadd.f32 %v1616_v48, %v1614_v47  ;;  %v550_v27 = vadd.f32 %v1608_v23, %v1606_v22  ;;  %v565_v28 = vadd.f32 %v1628_v4, %v1626_v3 }
 0x12d   : > { %v559_v29 = vadd.f32 %v1620_v50, %v1618_v49  ;;  %v553_v30 = vadd.f32 %v1612_v32, %v1610_v31  ;;  %v571_v33 = vadd.f32 %v1636_v24, %v1634_v21  ;;  %v568_v34 = vadd.f32 %v1632_v13, %v1630_v12 }
 0x12e   : > { %563 = vadd.xlane.f32.xlu2 %v562_v25  ;;  %557 = vadd.xlane.f32.xlu1 %v556_v26  ;;  %vm541_vm4 = vcmask 7168   ;;  %v1478_v35 = vmov 0.0  }
 0x12f   : > { %551 = vadd.xlane.f32.xlu0 %v550_v27  ;;  %542 = vst.msk [vmem:[#allocation2] sm:$0xff] %vm541_vm4, %v1478_v35 }
 0x130   : > { %543 = vst.msk [vmem:[#allocation2 + $0x8] sm:$0xff] %vm541_vm4, %v1478_v35 }
 0x131   : > { %544 = vst.msk [vmem:[#allocation2 + $0x10] sm:$0xff] %vm541_vm4, %v1478_v35 }
 0x132   : > { %545 = vst.msk [vmem:[#allocation2 + $0x18] sm:$0xff] %vm541_vm4, %v1478_v35 }
 0x136   : > { %566 = vadd.xlane.f32.xlu2 %v565_v28  ;;  %560 = vadd.xlane.f32.xlu1 %v559_v29  ;;  %v546_v39 = vld [vmem:[#allocation2] sm:$0xff] }
 0x137   : > { %554 = vadd.xlane.f32.xlu0 %v553_v30  ;;  %v547_v45 = vld [vmem:[#allocation2 + $0x8] sm:$0xff] }
 0x138   : > { %v548_v56 = vld [vmem:[#allocation2 + $0x10] sm:$0xff] }
 0x139   : > { %v549_v53 = vld [vmem:[#allocation2 + $0x18] sm:$0xff] }
 0x13e   : > { %572 = vadd.xlane.f32.xlu1 %v571_v33 }
 0x13f   : > { %569 = vadd.xlane.f32.xlu0 %v568_v34 }
 0x1a1   : > { %v564_v36 = vpop.xlane.xlu2 %563  ;;  %v558_v37 = vpop.xlane.xlu1 %557 }
 0x1a2   : > { %v552_v38 = vpop.xlane.xlu0 %551 }
 0x1a3   : > { %v574_v40 = vadd.f32 %v564_v36, %v552_v38 }
 0x1a5   : > { %v578_v41 = vadd.f32 %v574_v40, %v546_v39 }
 0x1a7   : > { %583 = vst.msk [vmem:[#allocation2] sm:$0xff] %vm541_vm4, %v578_v41 }
 0x1a9   : > { %v567_v42 = vpop.xlane.xlu2 %566  ;;  %v561_v43 = vpop.xlane.xlu1 %560 }
 0x1aa   : > { %v555_v44 = vpop.xlane.xlu0 %554 }
 0x1ab   : > { %v575_v46 = vadd.f32 %v567_v42, %v555_v44 }
 0x1ad   : > { %v579_v51 = vadd.f32 %v575_v46, %v547_v45 }
 0x1af   : > { %584 = vst.msk [vmem:[#allocation2 + $0x8] sm:$0xff] %vm541_vm4, %v579_v51 }
 0x1b1   : > { %v573_v52 = vpop.xlane.xlu1 %572 }
 0x1b2   : > { %v577_v54 = vadd.f32 %v573_v52, %v561_v43  ;;  %v570_v55 = vpop.xlane.xlu0 %569 }
 0x1b3   : > { %v576_v57 = vadd.f32 %v570_v55, %v558_v37 }
 0x1b4   : > { %v581_v60 = vadd.f32 %v577_v54, %v549_v53 }
 0x1b5   : > { %v580_v61 = vadd.f32 %v576_v57, %v548_v56 }
 0x1b6   : > { %586 = vst.msk [vmem:[#allocation2 + $0x18] sm:$0xff] %vm541_vm4, %v581_v60 }
 0x1b7   : > { %585 = vst.msk [vmem:[#allocation2 + $0x10] sm:$0xff] %vm541_vm4, %v580_v61 }
 0x1b8 PF: > { %p587_p0 = scmp.eq.s32.totalorder %s1457_s21, 1 }
 0x1b9   : > { %v594_v0 = vld [vmem:[#allocation2 + $0x8] sm:$0xff] (%p587_p0)  ;;  %v593_v5 = vld [vmem:[#allocation2] sm:$0xff] (%p587_p0)  ;;  %v601_v8 = vld [vmem:[%s1936_s3] sm:$0xff] (%p587_p0)  ;;  %vm605_vm5 = vcmask (%p587_p0), 261120  }
 0x1ba   : > { %592 = sbr.rel (!%p587_p0) target bundleno = 815 (0x32f), region = 52  ;;  %v598_v6 = vmul.f32 (%p587_p0), 0.00390625, %v594_v0  ;;  %v597_v7 = vmul.f32 (%p587_p0), 0.00390625, %v593_v5  ;;  %v604_v9 = vld [vmem:[%s1936_s3 + $0x18] sm:$0xff] (%p587_p0)  ;;  %v602_v10 = vld [vmem:[%s1936_s3 + $0x8] sm:$0xff] (%p587_p0)  ;;  %v603_v11 = vld [vmem:[%s1936_s3 + $0x10] sm:$0xff] (%p587_p0) }
 0x1bb   : > { %v651_v26 = vld [vmem:[%s1937_s4] sm:$0xff] (%p587_p0)  ;;  %v654_v27 = vld [vmem:[%s1937_s4 + $0x18] sm:$0xff] (%p587_p0)  ;;  %v657_v28 = vld [vmem:[%s1937_s4 + $0x30] sm:$0xff] (%p587_p0) }
 0x1bc   : > { %v652_v29 = vld [vmem:[%s1937_s4 + $0x8] sm:$0xff] (%p587_p0)  ;;  %v655_v30 = vld [vmem:[%s1937_s4 + $0x20] sm:$0xff] (%p587_p0)  ;;  %v658_v33 = vld [vmem:[%s1937_s4 + $0x38] sm:$0xff] (%p587_p0) }
 0x1bd   : > { %v596_v62 = vld [vmem:[#allocation2 + $0x18] sm:$0xff] (%p587_p0)  ;;  %v653_v34 = vld [vmem:[%s1937_s4 + $0x10] sm:$0xff] (%p587_p0)  ;;  %v656_v35 = vld [vmem:[%s1937_s4 + $0x28] sm:$0xff] (%p587_p0) }
 0x1be   : > { %v595_v63 = vld [vmem:[#allocation2 + $0x10] sm:$0xff] (%p587_p0)  ;;  %v600_v1 = vmul.f32 (%p587_p0), 0.00390625, %v596_v62 }
 0x1bf   : > { %v599_v2 = vmul.f32 0.00390625, %v595_v63 }
 0x1c0   : > { %630 = vmatpush.msra.mxu0 %v600_v1  ;;  %1232 = vmatpush.msra.mxu3 %v600_v1 }
 0x1c2   : > { %631 = vmatpush.msra.mxu0 %v599_v2  ;;  %1233 = vmatpush.msra.mxu3 %v599_v2 }
 0x1c4   : > { %632 = vmatpush.msra.mxu0 %v598_v6  ;;  %1234 = vmatpush.msra.mxu3 %v598_v6 }
 0x1c6   : > { %633 = vmatpush.msra.mxu0 %v597_v7  ;;  %1235 = vmatpush.msra.mxu3 %v597_v7 }
 0x1c7   : > { %1198 = vmatmul.msk.f32.vlgmr.msra.gmra.mxu0 %vm605_vm5, %v601_v8  ;;  %1201 = vmatmul.msk.f32.vlgmr.msra.gmra.mxu3 %vm605_vm5, %v604_v9 }
 0x1cf   : > { %1199 = vmatmul.msk.f32.gmra.mxu0 %vm605_vm5, %v602_v10 }
 0x1d7   : > { %1200 = vmatmul.msk.f32.gmra.mxu0 %vm605_vm5, %v603_v11 }
 0x244   : > { %v635_v14 = vpop.f32.mrf.mxu0 }
 0x245   : > { %v647_v25 = vmax.f32 %v635_v14, 0.0 }
 0x24a   : > { %v644_v15 = vpop.f32.mrf.mxu3 }
 0x24b   : > { %v650_v16 = vmax.f32 %v644_v15, 0.0 }
 0x24c   : > { %v638_v17 = vpop.f32.mrf.mxu0 }
 0x24d   : > { %695 = vmatpush.msra.mxu1 %v650_v16  ;;  %1236 = vmatpush.msra.mxu2 %v650_v16  ;;  %v648_v20 = vmax.f32 %v638_v17, 0.0 }
 0x24e   : > { %1237 = vmatpush.msrb.mxu3 %v650_v16 }
 0x254   : > { %v641_v18 = vpop.f32.mrf.mxu0 }
 0x255   : > { %v649_v19 = vmax.f32 %v641_v18, 0.0 }
 0x257   : > { %696 = vmatpush.msra.mxu1 %v649_v19  ;;  %1238 = vmatpush.msra.mxu2 %v649_v19 }
 0x258   : > { %1239 = vmatpush.msrb.mxu3 %v649_v19 }
 0x259   : > { %697 = vmatpush.msra.mxu1 %v648_v20  ;;  %1240 = vmatpush.msra.mxu2 %v648_v20 }
 0x25a   : > { %1241 = vmatpush.msrb.mxu3 %v648_v20 }
 0x25b   : > { %698 = vmatpush.msra.mxu1 %v647_v25  ;;  %1242 = vmatpush.msra.mxu2 %v647_v25 }
 0x25c   : > { %1243 = vmatpush.msrb.mxu3 %v647_v25  ;;  %1202 = vmatmul.msk.f32.vlgmr.msra.gmra.mxu1 %vm605_vm5, %v651_v26 }
 0x25d   : > { %1205 = vmatmul.msk.f32.vlgmr.msra.gmra.mxu2 %vm605_vm5, %v654_v27  ;;  %1208 = vmatmul.msk.f32.vlgmr.msrb.gmra.mxu3 %vm605_vm5, %v657_v28 }
 0x264   : > { %1203 = vmatmul.msk.f32.gmra.mxu1 %vm605_vm5, %v652_v29 }
 0x265   : > { %1206 = vmatmul.msk.f32.gmra.mxu2 %vm605_vm5, %v655_v30  ;;  %1209 = vmatmul.msk.f32.gmra.mxu3 %vm605_vm5, %v658_v33 }
 0x26c   : > { %1204 = vmatmul.msk.f32.gmra.mxu1 %vm605_vm5, %v653_v34 }
 0x26d   : > { %1207 = vmatmul.msk.f32.gmra.mxu2 %vm605_vm5, %v656_v35 }
 0x2d9   : > { %v700_v36 = vpop.f32.mrf.mxu1 }
 0x2da   : > { %v1210_v37 = vmul.f32 -1.442695, %v700_v36 }
 0x2dc   : > { %1328 = vpow2.f32 %v1210_v37 }
 0x2e0   : > { %v709_v38 = vpop.f32.mrf.mxu2  ;;  %v718_v39 = vpop.f32.mrf.mxu3 }
 0x2e1   : > { %v1213_v40 = vmul.f32 -1.442695, %v709_v38  ;;  %v1216_v41 = vmul.f32 -1.442695, %v718_v39  ;;  %v703_v42 = vpop.f32.mrf.mxu1 }
 0x2e2   : > { %v1329_v43 = vpop.eup %1328  ;;  %v1211_v44 = vmul.f32 -1.442695, %v703_v42 }
 0x2e3   : > { %v748_v45 = vadd.f32 1.0, %v1329_v43  ;;  %1330 = vpow2.f32 %v1213_v40 }
 0x2e4   : > { %1332 = vpow2.f32 %v1216_v41 }
 0x2e5   : > { %1334 = vrcp.f32 %v748_v45  ;;  %v765_v16 = vand.u32 2147483647, %v748_v45  ;;  %v767_v18 = vand.u32 2147483648, %v748_v45  ;;  %vm761_vm6 = vweird.f32 %v748_v45 }
 0x2e6   : > { %1336 = vpow2.f32 %v1211_v44 }
 0x2e7   : > { %vm1749_vm8 = vcmp.eq.f32.partialorder %v765_v16, 8.507059e+37  ;;  %v768_v35 = vor.u32 1.1754944e-38, %v767_v18 }
 0x2e8   : > { %v712_v46 = vpop.f32.mrf.mxu2  ;;  %v721_v51 = vpop.f32.mrf.mxu3 }
 0x2e9   : > { %v1331_v52 = vpop.eup %1330  ;;  %v1214_v53 = vmul.f32 -1.442695, %v712_v46  ;;  %v706_v56 = vpop.f32.mrf.mxu1  ;;  %v1217_v61 = vmul.f32 -1.442695, %v721_v51 }
 0x2ea   : > { %v1333_v54 = vpop.eup %1332  ;;  %v1715_v55 = vadd.f32 1.0, %v1331_v52  ;;  %v1212_v0 = vmul.f32 -1.442695, %v706_v56 }
 0x2eb   : > { %v1717_v57 = vpop.eup %1334  ;;  %v1719_v60 = vadd.f32 1.0, %v1333_v54  ;;  %1338 = vpow2.f32 %v1214_v53 }
 0x2ec   : > { %v1337_v62 = vpop.eup %1336  ;;  %1340 = vrcp.f32 %v1715_v55  ;;  %v757_v63 = vmul.f32 %v1717_v57, %v748_v45  ;;  %v812_v26 = vand.u32 2147483648, %v1715_v55  ;;  %v810_v27 = vand.u32 2147483647, %v1715_v55 }
 0x2ed   : > { %1342 = vrcp.f32 %v1719_v60  ;;  %v1724_v1 = vadd.f32 1.0, %v1337_v62  ;;  %v857_v29 = vand.u32 2147483648, %v1719_v60  ;;  %vm762_vm7 = vweird.f32 %v1717_v57 }
 0x2ee   : > { %1344 = vpow2.f32 %v1217_v61  ;;  %v758_v6 = vsub.f32 1.0, %v757_v63  ;;  %vm806_vm9 = vweird.f32 %v1715_v55  ;;  %v813_v39 = vor.u32 1.1754944e-38, %v812_v26  ;;  %vm1761_vm10 = vmor %vm761_vm6, %vm762_vm7 }
 0x2ef   : > { %1346 = vrcp.f32 %v1724_v1  ;;  %v855_v40 = vand.u32 2147483647, %v1719_v60  ;;  %vm1766_vm12 = vcmp.eq.f32.partialorder %v810_v27, 8.507059e+37  ;;  %v1770_v46 = vor.u32 1.1754944e-38, %v857_v29 }
 0x2f0   : > { %v715_v2 = vpop.f32.mrf.mxu2  ;;  %1348 = vpow2.f32 %v1212_v0  ;;  %v759_v15 = vmul.f32 %v1717_v57, %v758_v6  ;;  %v780_v51 = vand.u32 2147483647, %v1724_v1  ;;  %vm851_vm13 = vweird.f32 %v1719_v60 }
 0x2f1   : > { %v1339_v5 = vpop.eup %1338  ;;  %v1215_v9 = vmul.f32 -1.442695, %v715_v2  ;;  %vm776_vm15 = vweird.f32 %v1724_v1  ;;  %vm1809_vm5 = vcmp.eq.f32.partialorder %v855_v40, 8.507059e+37 }
 0x2f2   : > { %v1727_v7 = vpop.eup %1340  ;;  %v1729_v8 = vadd.f32 1.0, %v1339_v5  ;;  %v760_v30 = vadd.f32 %v1717_v57, %v759_v15 }
 0x2f3   : > { %v802_v10 = vmul.f32 %v1727_v7, %v1715_v55  ;;  %v1733_v11 = vpop.eup %1342  ;;  %vm807_vm11 = vweird.f32 %v1727_v7 }
 0x2f4   : > { %1350 = vrcp.f32 %v1729_v8  ;;  %v1345_v14 = vpop.eup %1344  ;;  %v847_v28 = vmul.f32 %v1733_v11, %v1719_v60  ;;  %v764_v52 = vsel %vm1761_vm10, %v1717_v57, %v760_v30  ;;  %v825_v54 = vand.u32 2147483647, %v1729_v8  ;;  %vm1795_vm2 = vmor %vm806_vm9, %vm807_vm11 }
 0x2f5   : > { %v1737_v17 = vpop.eup %1346  ;;  %v803_v19 = vsub.f32 1.0, %v802_v10  ;;  %v1739_v20 = vadd.f32 1.0, %v1345_v14  ;;  %1352 = vpow2.f32 %v1215_v9  ;;  %v827_v63 = vand.u32 2147483648, %v1729_v8 }
 0x2f6   : > { %v1349_v25 = vpop.eup %1348  ;;  %v772_v37 = vmul.f32 %v1737_v17, %v1724_v1  ;;  %v848_v45 = vsub.f32 1.0, %v847_v28  ;;  %vm852_vm14 = vweird.f32 %v1733_v11  ;;  %v769_v5 = vsel %vm1749_vm8, %v768_v35, %v764_v52 }
 0x2f7   : > { %1354 = vrcp.f32 %v1739_v20  ;;  %v804_v36 = vmul.f32 %v1727_v7, %v803_v19  ;;  %v1756_v38 = vadd.f32 1.0, %v1349_v25  ;;  %vm821_vm1 = vweird.f32 %v1729_v8 }
 0x2f8   : > { %v773_v62 = vsub.f32 1.0, %v772_v37  ;;  %v849_v6 = vmul.f32 %v1733_v11, %v848_v45  ;;  %vm1799_vm3 = vcmp.eq.f32.partialorder %v825_v54, 8.507059e+37  ;;  %v870_v16 = vand.u32 2147483647, %v1739_v20 }
 0x2f9   : > { %1356 = vrcp.f32 %v1756_v38  ;;  %v805_v61 = vadd.f32 %v1727_v7, %v804_v36  ;;  %v828_v55 = vor.u32 1.1754944e-38, %v827_v63  ;;  %v872_v19 = vand.u32 2147483648, %v1739_v20 }
 0x2fa   : > { %v1351_v34 = vpop.eup %1350  ;;  %v774_v18 = vmul.f32 %v1737_v17, %v773_v62  ;;  %vm866_vm6 = vweird.f32 %v1739_v20  ;;  %v850_v29 = vadd.f32 %v1733_v11, %v849_v6  ;;  %vm777_vm8 = vweird.f32 %v1737_v17 }
 0x2fb   : > { %v817_v41 = vmul.f32 %v1351_v34, %v1729_v8  ;;  %v1353_v42 = vpop.eup %1352  ;;  %vm822_vm0 = vweird.f32 %v1351_v34  ;;  %v809_v8 = vsel %vm1795_vm2, %v1727_v7, %v805_v61  ;;  %vm871_vm9 = vcmp.eq.f32.partialorder %v870_v16, 8.507059e+37 }
 0x2fc   : > { %v1781_v0 = vadd.f32 1.0, %v1353_v42  ;;  %vm823_vm4 = vmor %vm821_vm1, %vm822_vm0  ;;  %v814_v33 = vsel %vm1766_vm12, %v813_v39, %v809_v8  ;;  %v775_v37 = vadd.f32 %v1737_v17, %v774_v18  ;;  %vm791_vm11 = vweird.f32 %v1756_v38 }
 0x2fd   : > { %v818_v53 = vsub.f32 1.0, %v817_v41  ;;  %v1355_v56 = vpop.eup %1354  ;;  %v797_v41 = vand.u32 2147483648, %v1756_v38  ;;  %vm1829_vm12 = vmor %vm851_vm13, %vm852_vm14  ;;  %v782_v62 = vand.u32 2147483648, %v1724_v1 }
 0x2fe   : > { %v862_v2 = vmul.f32 %v1355_v56, %v1739_v20  ;;  %1358 = vrcp.f32 %v1781_v0  ;;  %vm867_vm7 = vweird.f32 %v1355_v56  ;;  %v873_v20 = vor.u32 1.1754944e-38, %v872_v19  ;;  %vm1841_vm13 = vmor %vm776_vm15, %vm777_vm8 }
 0x2ff   : > { %v819_v57 = vmul.f32 %v1351_v34, %v818_v53  ;;  %v1357_v25 = vpop.eup %1356  ;;  %vm868_vm10 = vmor %vm866_vm6, %vm867_vm7  ;;  %v795_v53 = vand.u32 2147483647, %v1756_v38  ;;  %v854_v54 = vsel %vm1829_vm12, %v1733_v11, %v850_v29  ;;  %v840_v6 = vand.u32 2147483647, %v1781_v0 }
 0x300   : > { %v863_v15 = vsub.f32 1.0, %v862_v2  ;;  %v787_v30 = vmul.f32 %v1357_v25, %v1756_v38  ;;  %vm792_vm0 = vweird.f32 %v1357_v25  ;;  %v842_v2 = vand.u32 2147483648, %v1781_v0 }
 0x301   : > { %v820_v10 = vadd.f32 %v1351_v34, %v819_v57  ;;  %v798_v57 = vor.u32 1.1754944e-38, %v797_v41  ;;  %vm793_vm14 = vmor %vm791_vm11, %vm792_vm0  ;;  %v859_v9 = vsel %vm1809_vm5, %v1770_v46, %v854_v54  ;;  %vm796_vm15 = vcmp.eq.f32.partialorder %v795_v53, 8.507059e+37 }
 0x302   : > { %v864_v28 = vmul.f32 %v1355_v56, %v863_v15  ;;  %v788_v40 = vsub.f32 1.0, %v787_v30  ;;  %vm836_vm2 = vweird.f32 %v1781_v0  ;;  %v783_v38 = vor.u32 1.1754944e-38, %v782_v62 }
 0x303   : > { %v824_v27 = vsel %vm823_vm4, %v1351_v34, %v820_v10  ;;  %v779_v10 = vsel %vm1841_vm13, %v1737_v17, %v775_v37  ;;  %v843_v18 = vor.u32 1.1754944e-38, %v842_v2  ;;  %vm781_vm4 = vcmp.eq.f32.partialorder %v780_v51, 8.507059e+37 }
 0x304   : > { %v829_v7 = vsel %vm1799_vm3, %v828_v55, %v824_v27  ;;  %v865_v36 = vadd.f32 %v1355_v56, %v864_v28  ;;  %v1359_v34 = vpop.eup %1358  ;;  %v789_v52 = vmul.f32 %v1357_v25, %v788_v40  ;;  %vm841_vm5 = vcmp.eq.f32.partialorder %v840_v6, 8.507059e+37 }
 0x305   : > { %v876_v35 = vsub.f32 %v769_v5, %v829_v7  ;;  %v832_v45 = vmul.f32 %v1359_v34, %v1781_v0  ;;  %vm837_vm1 = vweird.f32 %v1359_v34  ;;  %v784_v19 = vsel %vm781_vm4, %v783_v38, %v779_v10 }
 0x306   : > { %v869_v43 = vsel %vm868_vm10, %v1355_v56, %v865_v36  ;;  %v790_v63 = vadd.f32 %v1357_v25, %v789_v52  ;;  %vm838_vm3 = vmor %vm836_vm2, %vm837_vm1  ;;  %vm956_vm10 = vcmask 7168  }
 0x307   : > { %v1218_v42 = vmul.f32 -1.442695, %v876_v35  ;;  %v874_v44 = vsel %vm871_vm9, %v873_v20, %v869_v43  ;;  %v833_v61 = vsub.f32 1.0, %v832_v45 }
 0x308   : > { %v879_v56 = vsub.f32 %v814_v33, %v874_v44  ;;  %v794_v14 = vsel %vm793_vm14, %v1357_v25, %v790_v63 }
 0x309   : > { %1360 = vpow2.f32 %v1218_v42  ;;  %v834_v11 = vmul.f32 %v1359_v34, %v833_v61  ;;  %v799_v15 = vsel %vm796_vm15, %v798_v57, %v794_v14 }
 0x30a   : > { %v1221_v5 = vmul.f32 -1.442695, %v879_v56  ;;  %v878_v8 = vsub.f32 %v799_v15, %v859_v9 }
 0x30b   : > { %v835_v16 = vadd.f32 %v1359_v34, %v834_v11 }
 0x30c   : > { %1362 = vpow2.f32 %v1221_v5  ;;  %v1220_v17 = vmul.f32 -1.442695, %v878_v8 }
 0x30d   : > { %v839_v46 = vsel %vm838_vm3, %v1359_v34, %v835_v16 }
 0x30e   : > { %v844_v25 = vsel %vm841_vm5, %v843_v18, %v839_v46 }
 0x30f   : > { %v1361_v55 = vpop.eup %1360  ;;  %v877_v27 = vsub.f32 %v784_v19, %v844_v25 }
 0x310   : > { %v892_v26 = vadd.f32 1.0, %v1361_v55 }
 0x311   : > { %v1219_v29 = vmul.f32 -1.442695, %v877_v27 }
 0x312   : > { %1364 = vrcp.f32 %v892_v26  ;;  %v1363_v28 = vpop.eup %1362  ;;  %v905_v34 = vand.u32 2147483647, %v892_v26  ;;  %v907_v37 = vand.u32 2147483648, %v892_v26  ;;  %vm901_vm7 = vweird.f32 %v892_v26 }
 0x313   : > { %1366 = vpow2.f32 %v1220_v17  ;;  %v895_v0 = vadd.f32 1.0, %v1363_v28 }
 0x314   : > { %1368 = vpow2.f32 %v1219_v29  ;;  %vm906_vm9 = vcmp.eq.f32.partialorder %v905_v34, 8.507059e+37  ;;  %v908_v45 = vor.u32 1.1754944e-38, %v907_v37 }
 0x315   : > { %1370 = vrcp.f32 %v895_v0  ;;  %v952_v39 = vand.u32 2147483648, %v895_v0  ;;  %v950_v53 = vand.u32 2147483647, %v895_v0  ;;  %vm946_vm12 = vweird.f32 %v895_v0 }
 0x317   : > { %v953_v62 = vor.u32 1.1754944e-38, %v952_v39  ;;  %vm951_vm13 = vcmp.eq.f32.partialorder %v950_v53, 8.507059e+37 }
 0x318   : > { %v1365_v7 = vpop.eup %1364 }
 0x319   : > { %v1367_v30 = vpop.eup %1366  ;;  %v897_v33 = vmul.f32 %v1365_v7, %v892_v26  ;;  %vm902_vm6 = vweird.f32 %v1365_v7 }
 0x31a   : > { %v894_v35 = vadd.f32 1.0, %v1367_v30  ;;  %v1369_v1 = vpop.eup %1368  ;;  %vm903_vm8 = vmor %vm901_vm7, %vm902_vm6 }
 0x31b   : > { %v898_v51 = vsub.f32 1.0, %v897_v33  ;;  %v1371_v36 = vpop.eup %1370  ;;  %v893_v41 = vadd.f32 1.0, %v1369_v1 }
 0x31c   : > { %1372 = vrcp.f32 %v894_v35  ;;  %v942_v40 = vmul.f32 %v1371_v36, %v895_v0  ;;  %vm947_vm11 = vweird.f32 %v1371_v36  ;;  %v937_v11 = vand.u32 2147483648, %v894_v35 }
 0x31d   : > { %v899_v20 = vmul.f32 %v1365_v7, %v898_v51  ;;  %1374 = vrcp.f32 %v893_v41  ;;  %vm948_vm0 = vmor %vm946_vm12, %vm947_vm11  ;;  %v935_v10 = vand.u32 2147483647, %v894_v35  ;;  %vm931_vm1 = vweird.f32 %v894_v35 }
 0x31e   : > { %v943_v43 = vsub.f32 1.0, %v942_v40  ;;  %v922_v16 = vand.u32 2147483648, %v893_v41  ;;  %v938_v38 = vor.u32 1.1754944e-38, %v937_v11  ;;  %v920_v18 = vand.u32 2147483647, %v893_v41 }
 0x31f   : > { %v900_v42 = vadd.f32 %v1365_v7, %v899_v20  ;;  %vm936_vm3 = vcmp.eq.f32.partialorder %v935_v10, 8.507059e+37  ;;  %vm916_vm4 = vweird.f32 %v893_v41 }
 0x320   : > { %v944_v52 = vmul.f32 %v1371_v36, %v943_v43  ;;  %v923_v26 = vor.u32 1.1754944e-38, %v922_v16  ;;  %vm921_vm6 = vcmp.eq.f32.partialorder %v920_v18, 8.507059e+37 }
 0x321   : > { %v904_v44 = vsel %vm903_vm8, %v1365_v7, %v900_v42 }
 0x322   : > { %v1373_v54 = vpop.eup %1372  ;;  %v909_v56 = vsel %vm906_vm9, %v908_v45, %v904_v44  ;;  %v945_v61 = vadd.f32 %v1371_v36, %v944_v52 }
 0x323   : > { %957 = vst.msk [vmem:[#allocation3] sm:$0xff] %vm956_vm10, %v909_v56  ;;  %v927_v60 = vmul.f32 %v1373_v54, %v894_v35  ;;  %v1375_v63 = vpop.eup %1374  ;;  %vm932_vm14 = vweird.f32 %v1373_v54 }
 0x324   : > { %v949_v57 = vsel %vm948_vm0, %v1371_v36, %v945_v61  ;;  %v912_v6 = vmul.f32 %v1375_v63, %v893_v41  ;;  %vm933_vm15 = vmor %vm931_vm1, %vm932_vm14  ;;  %vm917_vm2 = vweird.f32 %v1375_v63 }
 0x325   : > { %v928_v2 = vsub.f32 1.0, %v927_v60  ;;  %v954_v5 = vsel %vm951_vm13, %v953_v62, %v949_v57  ;;  %vm918_vm5 = vmor %vm916_vm4, %vm917_vm2 }
 0x326   : > { %960 = vst.msk [vmem:[#allocation3 + $0x18] sm:$0xff] %vm956_vm10, %v954_v5  ;;  %v913_v14 = vsub.f32 1.0, %v912_v6 }
 0x327   : > { %v929_v9 = vmul.f32 %v1373_v54, %v928_v2 }
 0x328   : > { %v914_v8 = vmul.f32 %v1375_v63, %v913_v14 }
 0x329   : > { %v930_v15 = vadd.f32 %v1373_v54, %v929_v9 }
 0x32a   : > { %v915_v19 = vadd.f32 %v1375_v63, %v914_v8 }
 0x32b   : > { %v934_v55 = vsel %vm933_vm15, %v1373_v54, %v930_v15 }
 0x32c   : > { %v939_v46 = vsel %vm936_vm3, %v938_v38, %v934_v55  ;;  %v919_v17 = vsel %vm918_vm5, %v1375_v63, %v915_v19 }
 0x32d   : > { %959 = vst.msk [vmem:[#allocation3 + $0x10] sm:$0xff] %vm956_vm10, %v939_v46  ;;  %v924_v25 = vsel %vm921_vm6, %v923_v26, %v919_v17 }
 0x32e   : > { %958 = vst.msk [vmem:[#allocation3 + $0x8] sm:$0xff] %vm956_vm10, %v924_v25 }
 0x32f PF: > { %p1222_p1 = scmp.ne.s32.totalorder %s1457_s21, 1 }
 0x331   : > { %963 = sbr.rel (%p1222_p1) target bundleno = 963 (0x3c3), region = 56 }
 0x336   : > { %v966_v27 = vld [vmem:[#allocation3 + $0x10] sm:$0xff]  ;;  %v964_v28 = vld [vmem:[#allocation3] sm:$0xff]  ;;  %v1479_v29 = vmov 0   ;;  %v967_v7 = vld [vmem:[#allocation3 + $0x18] sm:$0xff] }
 0x337   : > { %1377 = vset.pattern.permute.xlu1 %v1479_v29  ;;  %1376 = vset.pattern.permute.xlu0 %v1479_v29  ;;  %v996_v0 = vsub.f32 1.0, %v964_v28  ;;  %v965_v30 = vld [vmem:[#allocation3 + $0x8] sm:$0xff]  ;;  %v998_v35 = vsub.f32 1.0, %v966_v27  ;;  %v999_v1 = vsub.f32 1.0, %v967_v7 }
 0x338   : > { %980 = vperm.xlu1 %1377, %v966_v27   ;;  %970 = vperm.xlu0 %1376, %v964_v28   ;;  %v997_v33 = vsub.f32 1.0, %v965_v30 }
 0x339   : > { %1378 = vset.pattern.permute.xlu2 %v1479_v29 }
 0x33a   : > { %1002 = vperm.xlu2 %1378, %v996_v0  }
 0x340   : > { %985 = vperm.xlu1 %1377, %v967_v7   ;;  %975 = vperm.xlu0 %1376, %v965_v30  }
 0x342   : > { %1007 = vperm.xlu2 %1378, %v997_v33  }
 0x348   : > { %1017 = vperm.xlu1 %1377, %v999_v1   ;;  %1012 = vperm.xlu0 %1376, %v998_v35  }
 0x394   : > { %v1003_v51 = vpop.permute.xlu2 %1002 }
 0x395   : > { %v1020_v36 = vmul.f32 %v1003_v51, %v1622_v58  ;;  %v1021_v34 = vmul.f32 %v1003_v51, %v1624_v59 }
 0x39c   : > { %v1008_v45 = vpop.permute.xlu2 %1007 }
 0x39d   : > { %v1022_v39 = vmul.f32 %v1008_v45, %v1626_v3  ;;  %v1023_v44 = vmul.f32 %v1008_v45, %v1628_v4 }
 0x3aa   : > { %v981_v37 = vpop.permute.xlu1 %980  ;;  %v971_v20 = vpop.permute.xlu0 %970 }
 0x3ab   : > { %v988_v40 = vmul.f32 %v971_v20, %v1606_v22  ;;  %v989_v41 = vmul.f32 %v971_v20, %v1608_v23  ;;  %v992_v23 = vmul.f32 %v981_v37, %v1614_v47  ;;  %v993_v63 = vmul.f32 %v981_v37, %v1616_v48 }
 0x3ad   : > { %v1028_v42 = vadd.f32 %v1020_v36, %v988_v40  ;;  %v1029_v43 = vadd.f32 %v1021_v34, %v989_v41 }
 0x3af   : > { %1036 = vst [vmem:[%s1639_s15] sm:$0xff] %v1028_v42 }
 0x3b0   : > { %1037 = vst [vmem:[%s1639_s15 + $0x8] sm:$0xff] %v1029_v43 }
 0x3b2   : > { %v986_v58 = vpop.permute.xlu1 %985  ;;  %v976_v52 = vpop.permute.xlu0 %975 }
 0x3b3   : > { %v990_v59 = vmul.f32 %v976_v52, %v1610_v31  ;;  %v991_v53 = vmul.f32 %v976_v52, %v1612_v32  ;;  %v994_v56 = vmul.f32 %v986_v58, %v1618_v49  ;;  %v995_v3 = vmul.f32 %v986_v58, %v1620_v50 }
 0x3b5   : > { %v1030_v54 = vadd.f32 %v1022_v39, %v990_v59  ;;  %v1031_v22 = vadd.f32 %v1023_v44, %v991_v53 }
 0x3b7   : > { %1038 = vst [vmem:[%s1639_s15 + $0x10] sm:$0xff] %v1030_v54 }
 0x3b8   : > { %1039 = vst [vmem:[%s1639_s15 + $0x18] sm:$0xff] %v1031_v22 }
 0x3ba   : > { %v1018_v4 = vpop.permute.xlu1 %1017  ;;  %v1013_v61 = vpop.permute.xlu0 %1012 }
 0x3bb   : > { %v1026_v31 = vmul.f32 %v1018_v4, %v1634_v21  ;;  %v1027_v32 = vmul.f32 %v1018_v4, %v1636_v24  ;;  %v1024_v60 = vmul.f32 %v1013_v61, %v1630_v12  ;;  %v1025_v62 = vmul.f32 %v1013_v61, %v1632_v13 }
 0x3bd   : > { %v1034_v57 = vadd.f32 %v1026_v31, %v994_v56  ;;  %v1035_v47 = vadd.f32 %v1027_v32, %v995_v3  ;;  %v1032_v2 = vadd.f32 %v1024_v60, %v992_v23  ;;  %v1033_v5 = vadd.f32 %v1025_v62, %v993_v63 }
 0x3bf   : > { %1042 = vst [vmem:[%s1639_s15 + $0x30] sm:$0xff] %v1034_v57 }
 0x3c0   : > { %1043 = vst [vmem:[%s1639_s15 + $0x38] sm:$0xff] %v1035_v47 }
 0x3c1   : > { %1040 = vst [vmem:[%s1639_s15 + $0x20] sm:$0xff] %v1032_v2 }
 0x3c2   : > { %1041 = vst [vmem:[%s1639_s15 + $0x28] sm:$0xff] %v1033_v5 }
 0x3c3 PF: > { %s1231_s21 = sshll.u32 %s1461_s22, 6  ;;  %s1060_s26 = sshll.u32 %s1639_s15, 4  ;;  %s1061_s26 = int_to_ptr.vmem [resolvable:$true] %s1060_s26 }
 0x3c4   : > { %s1059_s27 = scalar_lea.hbm %s1938_s5, %s1231_s21  ;;  %s1045_s8 = scalar_lea.sflag [#allocation5], %s275_s14 }
 0x3c5   : > { %s1062_s7 = sshll.u32 %s1059_s27, 4  ;;  %s1399_s22 = scalar_lea.hbm %s1938_s5, 128  ;;  %s1063_s7 = int_to_ptr.hbm [resolvable:$true] %s1062_s7 }
 0x3c6   : > { %s1393_s16 = sshra.s32 %s1063_s7, 4  ;;  %s1394_s16 = int_to_ptr.hbm [resolvable:$true] %s1393_s16 }
 0x3c7   : > { %s1395_s17 = scalar_lea.hbm %s1394_s16, 64  ;;  %p1400_p6 = scmp.lt.s32.totalorder %s1394_s16, %s1938_s5 }
 0x3c8   : > { %p1396_p2 = scmp.ne.s32.totalorder %s1394_s16, %s1395_s17  ;;  %p1401_p7 = scmp.lt.s32.totalorder %s1399_s22, %s1395_s17 }
 0x3ca   : > { %p1397_p4 = pnand %p1396_p2, %p1561_p3  ;;  %p1402_p8 = por %p1401_p7, %p1400_p6 }
 0x3cc   : > { %p1398_p5 = pneg %p1397_p4 }
 0x3ce   : > { %p1403_p10 = pnand %p1402_p8, %p1398_p5 }
 0x3d0   : > { %1406 = shalt.err (!%p1403_p10)
}
 0x3d1   : > { %s1480_s14 = smov 256   ;;  %s1481_s15 = smov 16  }
 0x3d2   : > { %1244 = dma.vmem_to_hbm [thread:$0]  (%p1561_p3), %s1061_s26, 1024, %s1063_s7, %s1045_s8, %s1480_s14, %s1480_s14, %s1481_s15  }
 0x3d3 PF: > { %p1250_p11 = scmp.ge.s32.totalorder %s1473_s25, 2  ;;  %s1077_s21 = sand.u32 1, %s1445_s18  }
 0x3d4   : > { %s1078_s0 = scalar_lea.sflag [#allocation5], %s1077_s21 }
 0x3d5   : > { %p1247_p12 = pnand %p1250_p11, %p1571_p9 }
 0x3d7   : > { %p1248_p13 = pneg %p1247_p12 }
 0x3d9   : > { %1440 = dma.done.wait (%p1248_p13), %s1078_s0, 1024  }
 0x3da   : > { %1442 = vsyncadd (%p1248_p13), %s1078_s0, 4294966272  ;;  %s18_s25 = sadd.s32 1, %s1473_s25   ;;  %s1959_s18 = smov %s1449_s19 }
 0x3db   : > { %p15_p0 = scmp.ge.s32.totalorder %s18_s25, 6   ;;  %s1960_s19 = smov %s1453_s20 }
 0x3dc   : > { %s1961_s20 = smov %s1579_s9  ;;  %s1962_s21 = smov %s1465_s23 }
 0x3dd   : > { %s1963_s22 = smov %s1469_s24  ;;  %s1964_s23 = smov %s1967_s28 }
 0x3de   : > { %s1965_s24 = smov %s1971_s29  ;;  %17 = sbr.rel (!%p15_p0) target bundleno = 7 (0x7), region = 94 }
 0x3e3   :  { %1084 = vsyncpa [#allocation5], 1 }
 0x3e4   :  { %1086 = vsyncpa [#allocation5 + $0x1], 1 }

</bundles_post_ra>
